<compile_context>
chip_gen: v7x
topology: tpu7x:2x2x1
jax: 0.10.0
libtpu: 0.0.40
codegen_flags: <defaults>
</compile_context>

<pallas_src>
import jax
import jax.numpy as jnp
import numpy as np
from jax import lax
from jax.experimental import pallas as pl
from jax.experimental.pallas import tpu as pltpu


def _parallel_pathways_kernel(xp_ref, w2a_ref, b2a_ref, mask_ref,
                              rf_ref, bf_ref, o_ref):
    # xp_ref  : (B, Hp, Wp*Cin)    zero-padded NHWC input, lane-dense
    # w2a_ref : (Wp*Cin, Wp*Cmid)  block-diag(w2a): path2 first 1x1 conv
    # b2a_ref : (1, Wp*Cmid)       its bias, tiled over Wp
    # mask_ref: (Hp, Wp*Cmid)      1 on the interior, 0 on the 1-px halo ring
    # rf_ref  : (Kf, W*Cout)       fused banded weight [path1 1x1 | path2 3x3]
    # bf_ref  : (1, W*Cout)        fused bias (0.5 pathway scalars folded in)
    # o_ref   : (B, H, W*Cout)     lane-dense output block
    B, Hp, WpCin = xp_ref.shape
    H = o_ref.shape[1]
    WCout = o_ref.shape[2]
    WpCmid = mask_ref.shape[1]

    xp = xp_ref[...]                                           # (B, Hp, Wp*Cin)

    # --- path2 first 1x1 conv + ReLU, lane-dense on the padded grid ---------
    y = jnp.dot(xp.reshape(B * Hp, WpCin), w2a_ref[...],
                preferred_element_type=jnp.float32) + b2a_ref[...]
    y = jnp.maximum(y, 0.0).reshape(B, Hp, WpCmid)
    # padding=1 is applied AFTER the ReLU, so the halo ring must be exactly 0.
    y = y * mask_ref[...]

    # --- fused final matmul: path1 1x1 + path2 3x3 + channel concat ---------
    # L row (b, h) = [x interior row h | y rows h, h+1, h+2]; the banded weight
    # rf turns this into the full (W*Cout)-wide output row in one MXU pass.
    L = jnp.concatenate(
        [xp[:, 1:H + 1, :], y[:, 0:H, :], y[:, 1:H + 1, :], y[:, 2:H + 2, :]],
        axis=-1)                                               # (B, H, Kf)
    Kf = L.shape[-1]
    out = jnp.dot(L.reshape(B * H, Kf), rf_ref[...],
                  preferred_element_type=jnp.float32) + bf_ref[...]
    o_ref[...] = out.reshape(B, H, WCout).astype(o_ref.dtype)


def _is_multi_tensorcore_chip():
    try:
        kind = jax.devices()[0].device_kind.lower()
    except Exception:
        return False
    return ("v7" in kind) or ("7x" in kind)


def parallel_pathways(x_nchw, params):
    """x_nchw: (N, Cin, H, W) float32 (PyTorch NCHW convention)."""
    N, Cin, H, W = x_nchw.shape
    Ch = params["w_p1"].shape[0]          # out_channels // 2
    Cmid = params["w_p2a"].shape[0]       # in_channels // 2
    Cout = 2 * Ch
    Hp, Wp = H + 2, W + 2
    f32 = jnp.float32

    # ---------------- lane-dense padded input ----------------
    x = jnp.transpose(x_nchw, (0, 2, 3, 1))                     # NCHW -> NHWC
    xp = jnp.pad(x, ((0, 0), (1, 1), (1, 1), (0, 0)))
    xp_dense = xp.reshape(N, Hp, Wp * Cin).astype(f32)          # (N, Hp, Wp*Cin)

    # ---------------- one-time parameter transforms ----------------
    a1 = jnp.asarray(params["path1_weight"], f32)
    a2 = jnp.asarray(params["path2_weight"], f32)
    w1 = jnp.transpose(params["w_p1"], (2, 3, 1, 0))[0, 0].astype(f32)   # (Cin, Ch)
    w2a = jnp.transpose(params["w_p2a"], (2, 3, 1, 0))[0, 0].astype(f32)  # (Cin, Cmid)
    w2b = jnp.transpose(params["w_p2b"], (2, 3, 1, 0)).astype(f32)        # (3,3,Cmid,Ch)
    b1 = params["b_p1"].astype(f32)
    b2a = params["b_p2a"].astype(f32)
    b2b = params["b_p2b"].astype(f32)

    # path2 first 1x1 conv as a lane-dense block-diagonal matmul.
    w2a_big = jnp.kron(jnp.eye(Wp, dtype=f32), w2a)             # (Wp*Cin, Wp*Cmid)
    b2a_dense = jnp.tile(b2a, Wp).reshape(1, Wp * Cmid)

    # constant halo mask (rows 0/Hp-1 and padded columns zeroed), hoisted here.
    rowm = ((jnp.arange(Hp) >= 1) & (jnp.arange(Hp) <= H)).astype(f32)
    colm = jnp.repeat(((jnp.arange(Wp) >= 1) & (jnp.arange(Wp) <= W)).astype(f32), Cmid)
    mask = rowm[:, None] * colm[None, :]                        # (Hp, Wp*Cmid)

    # Fused banded weight: row groups = [x (padded col j, ci)] +
    # [y at kh=0,1,2 (padded col j, c)]; cols = (w, out-channel).
    def sel(shift):                       # (Wp, W): sel[w+shift, w] = 1
        return jnp.eye(Wp, W, k=-shift, dtype=f32)

    zeros_h = jnp.zeros((Cin, Ch), f32)
    r_p1 = jnp.kron(sel(1), jnp.concatenate([a1 * w1, zeros_h], axis=1))
    zeros_m = jnp.zeros((Cmid, Ch), f32)
    r_p2 = []
    for kh in range(3):
        blk = sum(jnp.kron(sel(kw),
                           jnp.concatenate([zeros_m, a2 * w2b[kh, kw]], axis=1))
                  for kw in range(3))
        r_p2.append(blk)
    rf = jnp.concatenate([r_p1] + r_p2, axis=0)                 # (Kf, W*Cout)
    bf = jnp.tile(jnp.concatenate([a1 * b1, a2 * b2b]), W).reshape(1, W * Cout)
    Kf = Wp * Cin + 3 * Wp * Cmid

    # ---------------- grid choice ----------------
    # v7x (2 TensorCores): keep >=2 parallel steps (1 image / step).
    # v5e/v6e (1 TensorCore): whole batch in one step (no per-step overhead,
    # larger matmul M).
    imgs = 1 if (_is_multi_tensorcore_chip() and N > 1) else N
    grid = (N // imgs,)

    def const2d(shape):
        return pl.BlockSpec(shape, lambda n: (0, 0))

    out_dense = pl.pallas_call(
        _parallel_pathways_kernel,
        out_shape=jax.ShapeDtypeStruct((N, H, W * Cout), f32),
        grid_spec=pltpu.PrefetchScalarGridSpec(
            num_scalar_prefetch=0,
            grid=grid,
            in_specs=[
                pl.BlockSpec((imgs, Hp, Wp * Cin), lambda n: (n, 0, 0)),
                const2d((Wp * Cin, Wp * Cmid)),
                const2d((1, Wp * Cmid)),
                const2d((Hp, Wp * Cmid)),
                const2d((Kf, W * Cout)),
                const2d((1, W * Cout)),
            ],
            out_specs=pl.BlockSpec((imgs, H, W * Cout), lambda n: (n, 0, 0)),
        ),
        compiler_params=pltpu.CompilerParams(
            dimension_semantics=("parallel",)),
    )(xp_dense, w2a_big, b2a_dense, mask, rf, bf)

    # (N, H, W*Cout) -> (N, H, W, Cout) -> NCHW
    return jnp.transpose(out_dense.reshape(N, H, W, Cout), (0, 3, 1, 2))


def _reference(x_nchw, params):
    """Pure-JAX reference matching the PyTorch forward."""
    x = jnp.transpose(x_nchw, (0, 2, 3, 1))

    def conv(inp, w_oihw, b, pad):
        w = jnp.transpose(w_oihw, (2, 3, 1, 0))
        y = lax.conv_general_dilated(
            inp, w, (1, 1), [(pad, pad), (pad, pad)],
            dimension_numbers=("NHWC", "HWIO", "NHWC"))
        return y + b

    p1 = params["path1_weight"] * conv(x, params["w_p1"], params["b_p1"], 0)
    h = jax.nn.relu(conv(x, params["w_p2a"], params["b_p2a"], 0))
    p2 = params["path2_weight"] * conv(h, params["w_p2b"], params["b_p2b"], 1)
    out = jnp.concatenate([p1, p2], axis=-1)
    return jnp.transpose(out, (0, 3, 1, 2))


def _init_params(key, in_channels, out_channels):
    ch = out_channels // 2
    cmid = in_channels // 2
    ks = jax.random.split(key, 6)
    return {
        "w_p1": 0.2 * jax.random.normal(ks[0], (ch, in_channels, 1, 1), jnp.float32),
        "b_p1": 0.1 * jax.random.normal(ks[1], (ch,), jnp.float32),
        "w_p2a": 0.2 * jax.random.normal(ks[2], (cmid, in_channels, 1, 1), jnp.float32),
        "b_p2a": 0.1 * jax.random.normal(ks[3], (cmid,), jnp.float32),
        "w_p2b": 0.2 * jax.random.normal(ks[4], (ch, cmid, 3, 3), jnp.float32),
        "b_p2b": 0.1 * jax.random.normal(ks[5], (ch,), jnp.float32),
        "path1_weight": jnp.float32(0.5),   # as in the PyTorch ParameterDict init
        "path2_weight": jnp.float32(0.5),
    }


if __name__ == "__main__":
    key = jax.random.PRNGKey(0)
    k_x, k_p = jax.random.split(key)

    N, Cin, Cout, H, W = 2, 4, 8, 16, 16
    x = jax.random.normal(k_x, (N, Cin, H, W), jnp.float32)   # NCHW like PyTorch
    params = _init_params(k_p, Cin, Cout)

    out = jax.block_until_ready(parallel_pathways(x, params))
    ref = jax.block_until_ready(_reference(x, params))

    assert out.shape == (N, Cout, H, W), out.shape
    np.testing.assert_allclose(np.asarray(out), np.asarray(ref),
                               rtol=1e-4, atol=1e-4)
    print("KERNEL_OK")
</pallas_src>

<mosaic_0001>
module attributes {stable_mosaic.version = 11 : i64} {
  func.func @_parallel_pathways_kernel(%arg0: i32, %arg1: memref<2x18x72xf32, #tpu.memory_space<vmem>>, %arg2: memref<72x36xf32, #tpu.memory_space<vmem>>, %arg3: memref<1x36xf32, #tpu.memory_space<vmem>>, %arg4: memref<18x36xf32, #tpu.memory_space<vmem>>, %arg5: memref<180x128xf32, #tpu.memory_space<vmem>>, %arg6: memref<1x128xf32, #tpu.memory_space<vmem>>, %arg7: memref<2x16x128xf32, #tpu.memory_space<vmem>>) attributes {dimension_semantics = [#tpu.dimension_semantics<parallel>], iteration_bounds = array<i64: 1>, scalar_prefetch = 0 : i64, scratch_operands = 0 : i64, tpu.core_type = #tpu.core_type<tc>, window_params = [{transform_indices = @transform_0, window_bounds = array<i64: 2, 18, 72>}, {pipeline_mode = #tpu.pipeline_mode<synchronous>, transform_indices = @transform_1, window_bounds = array<i64: 72, 36>}, {pipeline_mode = #tpu.pipeline_mode<synchronous>, transform_indices = @transform_2, window_bounds = array<i64: 1, 36>}, {pipeline_mode = #tpu.pipeline_mode<synchronous>, transform_indices = @transform_3, window_bounds = array<i64: 18, 36>}, {pipeline_mode = #tpu.pipeline_mode<synchronous>, transform_indices = @transform_4, window_bounds = array<i64: 180, 128>}, {pipeline_mode = #tpu.pipeline_mode<synchronous>, transform_indices = @transform_5, window_bounds = array<i64: 1, 128>}, {transform_indices = @transform_6, window_bounds = array<i64: 2, 16, 128>}]} {
    %c0 = arith.constant 0 : index
    %c0_0 = arith.constant 0 : index
    %c0_1 = arith.constant 0 : index
    %0 = vector.load %arg1[%c0, %c0_0, %c0_1] : memref<2x18x72xf32, #tpu.memory_space<vmem>>, vector<2x18x72xf32>
    %1 = vector.shape_cast %0 : vector<2x18x72xf32> to vector<36x72xf32>
    %c0_2 = arith.constant 0 : index
    %c0_3 = arith.constant 0 : index
    %2 = vector.load %arg2[%c0_2, %c0_3] : memref<72x36xf32, #tpu.memory_space<vmem>>, vector<72x36xf32>
    %cst = arith.constant dense<0.000000e+00> : vector<36x36xf32>
    %3 = tpu.matmul %1, %2, %cst {dimension_numbers = #tpu.dot_dimension_numbers<[1], [0], [0], [1], [0, 0, 1, 1], [], []>} : vector<36x72xf32>, vector<72x36xf32>, vector<36x36xf32> -> vector<36x36xf32>
    %c0_4 = arith.constant 0 : index
    %c0_5 = arith.constant 0 : index
    %4 = vector.load %arg3[%c0_4, %c0_5] : memref<1x36xf32, #tpu.memory_space<vmem>>, vector<1x36xf32>
    %5 = vector.broadcast %4 : vector<1x36xf32> to vector<36x36xf32>
    %6 = arith.addf %3, %5 : vector<36x36xf32>
    %cst_6 = arith.constant 0.000000e+00 : f32
    %7 = vector.broadcast %cst_6 : f32 to vector<36x36xf32>
    %8 = arith.maximumf %6, %7 : vector<36x36xf32>
    %9 = vector.shape_cast %8 : vector<36x36xf32> to vector<2x18x36xf32>
    %c0_7 = arith.constant 0 : index
    %c0_8 = arith.constant 0 : index
    %10 = vector.load %arg4[%c0_7, %c0_8] : memref<18x36xf32, #tpu.memory_space<vmem>>, vector<18x36xf32>
    %11 = vector.shape_cast %10 : vector<18x36xf32> to vector<1x18x36xf32>
    %12 = vector.broadcast %11 : vector<1x18x36xf32> to vector<2x18x36xf32>
    %13 = arith.mulf %9, %12 : vector<2x18x36xf32>
    %14 = vector.extract_strided_slice %0 {offsets = [0, 1, 0], sizes = [2, 16, 72], strides = [1, 1, 1]} : vector<2x18x72xf32> to vector<2x16x72xf32>
    %15 = vector.extract_strided_slice %13 {offsets = [0, 0, 0], sizes = [2, 16, 36], strides = [1, 1, 1]} : vector<2x18x36xf32> to vector<2x16x36xf32>
    %16 = vector.extract_strided_slice %13 {offsets = [0, 1, 0], sizes = [2, 16, 36], strides = [1, 1, 1]} : vector<2x18x36xf32> to vector<2x16x36xf32>
    %17 = vector.extract_strided_slice %13 {offsets = [0, 2, 0], sizes = [2, 16, 36], strides = [1, 1, 1]} : vector<2x18x36xf32> to vector<2x16x36xf32>
    %18 = tpu.concatenate %14, %15, %16, %17 in 2 : vector<2x16x72xf32>, vector<2x16x36xf32>, vector<2x16x36xf32>, vector<2x16x36xf32> -> vector<2x16x180xf32>
    %19 = vector.shape_cast %18 : vector<2x16x180xf32> to vector<32x180xf32>
    %c0_9 = arith.constant 0 : index
    %c0_10 = arith.constant 0 : index
    %20 = vector.load %arg5[%c0_9, %c0_10] : memref<180x128xf32, #tpu.memory_space<vmem>>, vector<180x128xf32>
    %cst_11 = arith.constant dense<0.000000e+00> : vector<32x128xf32>
    %21 = tpu.matmul %19, %20, %cst_11 {dimension_numbers = #tpu.dot_dimension_numbers<[1], [0], [0], [1], [0, 0, 1, 1], [], []>} : vector<32x180xf32>, vector<180x128xf32>, vector<32x128xf32> -> vector<32x128xf32>
    %c0_12 = arith.constant 0 : index
    %c0_13 = arith.constant 0 : index
    %22 = vector.load %arg6[%c0_12, %c0_13] : memref<1x128xf32, #tpu.memory_space<vmem>>, vector<1x128xf32>
    %23 = vector.broadcast %22 : vector<1x128xf32> to vector<32x128xf32>
    %24 = arith.addf %21, %23 : vector<32x128xf32>
    %25 = vector.shape_cast %24 : vector<32x128xf32> to vector<2x16x128xf32>
    %c0_14 = arith.constant 0 : index
    %c0_15 = arith.constant 0 : index
    %c0_16 = arith.constant 0 : index
    %26 = vector.load %arg7[%c0_14, %c0_15, %c0_16] : memref<2x16x128xf32, #tpu.memory_space<vmem>>, vector<2x16x128xf32>
    tpu.vector_store %arg7[%c0_14, %c0_15, %c0_16], %25 {strides = array<i32>} : memref<2x16x128xf32, #tpu.memory_space<vmem>>, vector<2x16x128xf32>,
    return
  }
  func.func @transform_0(%arg0: i32) -> (i32, i32, i32) {
    %c0_i32 = arith.constant 0 : i32
    %c0_i32_0 = arith.constant 0 : i32
    %c0_i32_1 = arith.constant 0 : i32
    return %arg0, %c0_i32, %c0_i32_0 : i32, i32, i32
  }
  func.func @transform_1(%arg0: i32) -> (i32, i32) {
    %c0_i32 = arith.constant 0 : i32
    %c0_i32_0 = arith.constant 0 : i32
    %c0_i32_1 = arith.constant 0 : i32
    return %c0_i32, %c0_i32_0 : i32, i32
  }
  func.func @transform_2(%arg0: i32) -> (i32, i32) {
    %c0_i32 = arith.constant 0 : i32
    %c0_i32_0 = arith.constant 0 : i32
    %c0_i32_1 = arith.constant 0 : i32
    return %c0_i32, %c0_i32_0 : i32, i32
  }
  func.func @transform_3(%arg0: i32) -> (i32, i32) {
    %c0_i32 = arith.constant 0 : i32
    %c0_i32_0 = arith.constant 0 : i32
    %c0_i32_1 = arith.constant 0 : i32
    return %c0_i32, %c0_i32_0 : i32, i32
  }
  func.func @transform_4(%arg0: i32) -> (i32, i32) {
    %c0_i32 = arith.constant 0 : i32
    %c0_i32_0 = arith.constant 0 : i32
    %c0_i32_1 = arith.constant 0 : i32
    return %c0_i32, %c0_i32_0 : i32, i32
  }
  func.func @transform_5(%arg0: i32) -> (i32, i32) {
    %c0_i32 = arith.constant 0 : i32
    %c0_i32_0 = arith.constant 0 : i32
    %c0_i32_1 = arith.constant 0 : i32
    return %c0_i32, %c0_i32_0 : i32, i32
  }
  func.func @transform_6(%arg0: i32) -> (i32, i32, i32) {
    %c0_i32 = arith.constant 0 : i32
    %c0_i32_0 = arith.constant 0 : i32
    %c0_i32_1 = arith.constant 0 : i32
    return %arg0, %c0_i32, %c0_i32_0 : i32, i32, i32
  }
}

</mosaic_0001>

<bundles_post_ra>
// kernel: tpu_custom_call.1
= control target key start
LH: loop header
LB: loop body
LE: loop exit
PB: predicated region body
PF: predicated region fallthrough
CT: control target
= control target key end

     0   :  { %v40_v3 = vlaneseq  ;;  %v1089_v4 = vmov 0.0|0.0   ;;  %vm1090_vm0 = vmmov 0   ;;  %v1091_v7 = vmov 0.0   ;;  %s1480_s0 = inlined_call_operand.vmem [shape: f32[2,18,72], index: 0, kind: input, shape index: {}]   ;;  %s1481_s1 = inlined_call_operand.vmem [shape: f32[72,36], index: 1, kind: input, shape index: {}]   ;;  %s1482_s2 = inlined_call_operand.vmem [shape: f32[1,36], index: 2, kind: input, shape index: {}]   ;;  %s1483_s3 = inlined_call_operand.vmem [shape: f32[18,36], index: 3, kind: input, shape index: {}]   ;;  %s1484_s4 = inlined_call_operand.vmem [shape: f32[180,128], index: 4, kind: input, shape index: {}]   ;;  %s1485_s5 = inlined_call_operand.vmem [shape: f32[1,128], index: 5, kind: input, shape index: {}]   ;;  %s1486_s6 = inlined_call_operand.hbm [shape: f32[2,16,128], index: 6, kind: output, shape index: {}]  }
   0x1   :  { %v118_v0 = vld [vmem:[%s1481_s1] sm:$0xff]  ;;  %v119_v1 = vld [vmem:[%s1481_s1 + $0x8] sm:$0xff]  ;;  %v120_v2 = vld [vmem:[%s1481_s1 + $0x10] sm:$0xff]  ;;  %989 = vmatprep.subr.bf16.mxu0 %v1089_v4  ;;  %974 = vmatprep.mubr.msk.f32.mxu0 %vm1090_vm0, %v1091_v7  ;;  %v1092_v8 = vmov 1983009808  }
   0x2   :  { %v990_v5 = vpack.c.bf16 %v119_v1, %v118_v0  ;;  %v121_v6 = vld [vmem:[%s1481_s1 + $0x18] sm:$0xff]  ;;  %v38_v9 = vunpack.c.l.s4 %v1092_v8  ;;  %v41_v10 = vshrl.u32 %v40_v3, 7  ;;  %1001 = vmatprep.subr.bf16.mxu1 %v1089_v4  ;;  %v1153_v12 = vld [vmem:[%s1480_s0] sm:$0xff]  ;;  %v1158_v13 = vld [vmem:[%s1480_s0 + $0x8] sm:$0xff] }
   0x3   :  { %v993_v11 = vpack.c.bf16 %v121_v6, %v120_v2  ;;  %v122_v14 = vld [vmem:[%s1481_s1 + $0x20] sm:$0xff]  ;;  %v123_v15 = vld [vmem:[%s1481_s1 + $0x28] sm:$0xff]  ;;  %v36_v16 = vcombine.high %v1153_v12, %v1153_v12  ;;  %v53_v18 = vcombine.high %v1158_v13, %v1158_v13  ;;  %v1174_v19 = vld [vmem:[%s1480_s0 + $0x18] sm:$0xff] }
   0x4   :  { %991 = vmatpush3.bf16.msra.mxu0 %v990_v5  ;;  %v39_v17 = vunpack.c.0.s8 %v38_v9 }
   0x5   :  { %992 = vmatprep.subr.bf16.mxu0 %v1089_v4 }
   0x6   :  { %11 = vsyncpa [#allocation3], 0  ;;  %v124_v20 = vld [vmem:[%s1481_s1 + $0x30] sm:$0xff]  ;;  %v125_v21 = vld [vmem:[%s1481_s1 + $0x38] sm:$0xff]  ;;  %v1182_v22 = vsub.s32 %v39_v17, %v41_v10  ;;  %v996_v24 = vpack.c.bf16 %v123_v15, %v122_v14  ;;  %v77_v25 = vcombine.high %v1174_v19, %v1174_v19  ;;  %vm210_vm1 = vcmask 588800   ;;  %s1094_s14 = smov 16  }
   0x7   :  { %v1187_v23 = vld [vmem:[%s1480_s0 + $0x20] sm:$0xff]  ;;  %v1201_v30 = vld [vmem:[%s1480_s0 + $0x10] sm:$0x3]  ;;  %v999_v31 = vpack.c.bf16 %v125_v21, %v124_v20  ;;  %v1230_v62 = vld [vmem:[%s1480_s0 + $0x28] sm:$0x3]  ;;  %vm573_vm2 = vcmask 1040384  }
   0x8   :  { %994 = vmatpush3.bf16.msra.mxu0 %v993_v11  ;;  %v43_v26 = vrot.slane %v1153_v12, %v1182_v22  ;;  %v50_v27 = vrot.slane %v36_v16, %v1182_v22  ;;  %v60_v28 = vrot.slane %v1158_v13, %v1182_v22  ;;  %v67_v29 = vrot.slane %v53_v18, %v1182_v22  ;;  %v126_v52 = vld [vmem:[%s1481_s1 + $0x40] sm:$0xff]  ;;  %v782_v10 = vld [vmem:[%s1484_s4 + $0x8] sm:$0xff]  ;;  %v783_v11 = vld [vmem:[%s1484_s4 + $0x10] sm:$0xff]  ;;  %s1095_s23 = smov 72   ;;  %s1096_s29 = smov [#allocation2]  }
   0x9   :  { %995 = vmatprep.subr.bf16.mxu0 %v1089_v4  ;;  %v84_v32 = vrot.slane %v1174_v19, %v1182_v22  ;;  %v94_v33 = vcombine.high %v1187_v23, %v1187_v23  ;;  %v76_v38 = vrot.slane %v1201_v30, %v1182_v22  ;;  %v91_v39 = vrot.slane %v77_v25, %v1182_v22  ;;  %v781_v9 = vld [vmem:[%s1484_s4] sm:$0xff]  ;;  %v784_v15 = vld [vmem:[%s1484_s4 + $0x18] sm:$0xff]  ;;  %v786_v18 = vld [vmem:[%s1484_s4 + $0x28] sm:$0xff]  ;;  %s918_s30 = sshll.u32 %s1096_s29, 4  ;;  %s919_s30 = int_to_ptr.vmem [resolvable:$true] %s918_s30 }
   0xa   :  { %v51_v34 = vcombine.high %v43_v26, %v43_v26  ;;  %v52_v35 = vcombine.high %v50_v27, %v50_v27  ;;  %v68_v36 = vcombine.high %v60_v28, %v60_v28  ;;  %v69_v37 = vcombine.high %v67_v29, %v67_v29  ;;  %v785_v17 = vld [vmem:[%s1484_s4 + $0x20] sm:$0xff]  ;;  %v787_v21 = vld [vmem:[%s1484_s4 + $0x30] sm:$0xff]  ;;  %p1070_p1 = scmp.lt.s32.totalorder %s919_s30, %s919_s30 }
   0xb   :  { %v92_v40 = vcombine.high %v84_v32, %v84_v32  ;;  %v101_v41 = vrot.slane %v1187_v23, %v1182_v22  ;;  %v168_v48 = vcombine.low %v76_v38, %v84_v32  ;;  %v93_v50 = vcombine.high %v91_v39, %v91_v39 }
   0xc   :  { %997 = vmatpush3.bf16.msra.mxu0 %v996_v24  ;;  %v134_v42 = vcombine.low %v43_v26, %v51_v34  ;;  %v135_v43 = vcombine.low %v50_v27, %v52_v35  ;;  %v151_v44 = vcombine.low %v60_v28, %v68_v36  ;;  %v152_v45 = vcombine.low %v67_v29, %v69_v37  ;;  %v788_v24 = vld [vmem:[%s1484_s4 + $0x38] sm:$0xff]  ;;  %v789_v26 = vld [vmem:[%s1484_s4 + $0x40] sm:$0xff]  ;;  %v790_v27 = vld [vmem:[%s1484_s4 + $0x48] sm:$0xff] }
   0xd   :  { %998 = vmatprep.subr.bf16.mxu0 %v1089_v4  ;;  %v169_v49 = vcombine.low %v92_v40, %v91_v39  ;;  %v108_v51 = vrot.slane %v94_v33, %v1182_v22  ;;  %v109_v56 = vcombine.high %v101_v41, %v101_v41  ;;  %v185_v57 = vcombine.low %v93_v50, %v101_v41  ;;  %v791_v29 = vld [vmem:[%s1484_s4 + $0x50] sm:$0xff]  ;;  %v793_v33 = vld [vmem:[%s1484_s4 + $0x60] sm:$0xff]  ;;  %v794_v34 = vld [vmem:[%s1484_s4 + $0x68] sm:$0xff] }
   0xe   :  { %v142_v46 = vrot.slane %v134_v42, %v1182_v22  ;;  %v149_v47 = vrot.slane %v135_v43, %v1182_v22  ;;  %v159_v54 = vrot.slane %v151_v44, %v1182_v22  ;;  %v166_v55 = vrot.slane %v152_v45, %v1182_v22  ;;  %v415_v36 = vld [vmem:[%s1483_s3] sm:$0xff]  ;;  %v416_v40 = vld [vmem:[%s1483_s3 + $0x8] sm:$0xff] }
   0xf   :  { %v176_v59 = vrot.slane %v168_v48, %v1182_v22  ;;  %v183_v60 = vrot.slane %v169_v49, %v1182_v22  ;;  %v186_v61 = vcombine.low %v109_v56, %v108_v51  ;;  %v193_v63 = vrot.slane %v185_v57, %v1182_v22  ;;  %v1302_v37 = vld [vmem:[%s1482_s2] ss:$0 sm:$0xff] }
  0x10   :  { %1000 = vmatpush3.bf16.msra.mxu0 %v999_v31  ;;  %v150_v53 = vcombine.low %v142_v46, %v149_v47  ;;  %v167_v58 = vcombine.low %v159_v54, %v166_v55  ;;  %v110_v2 = vcombine.high %v108_v51, %v108_v51  ;;  %v117_v3 = vrot.slane %v1230_v62, %v1182_v22  ;;  %v792_v31 = vld [vmem:[%s1484_s4 + $0x58] sm:$0xff] }
  0x11   :  { %972 = vmatprep.subr.mxu0 %v1091_v7  ;;  %v184_v0 = vcombine.low %v176_v59, %v183_v60  ;;  %v200_v1 = vrot.slane %v186_v61, %v1182_v22  ;;  %v1002_v14 = vpack.c.bf16 %v782_v10, %v781_v9  ;;  %v1005_v16 = vpack.c.bf16 %v784_v15, %v783_v11  ;;  %v796_v54 = vld [vmem:[%s1484_s4 + $0x78] sm:$0xff] }
  0x12   :  { %v202_v6 = vcombine.low %v110_v2, %v117_v3  ;;  %v1008_v20 = vpack.c.bf16 %v786_v18, %v785_v17  ;;  %v1011_v25 = vpack.c.bf16 %v788_v24, %v787_v21  ;;  %v1014_v28 = vpack.c.bf16 %v790_v27, %v789_v26  ;;  %v935_v27 = vld.sshfl [vmem:[%s1483_s3 + $0x10] sm:$0x3 pattern:$0x76325410]  ;;  %s1093_s3 = smov 108  }
  0x13   :  { %v201_v5 = vcombine.low %v193_v63, %v200_v1  ;;  %1003 = vmatpush1.bf16.msra.mxu1 %v1002_v14  ;;  %v1017_v32 = vpack.c.bf16 %v792_v31, %v791_v29  ;;  %v1020_v35 = vpack.c.bf16 %v794_v34, %v793_v33  ;;  %v421_v38 = vcombine.high %v415_v36, %v415_v36 }
  0x14   :  { %973 = vmatpush3.msra.mxu0 %v126_v52  ;;  %v209_v8 = vrot.slane %v202_v6, %v1182_v22  ;;  %1004 = vmatprep.subr.bf16.mxu1 %v1089_v4  ;;  %v1309_v42 = vrot.slane %v415_v36, %v1182_v22  ;;  %v438_v46 = vcombine.high %v416_v40, %v416_v40  ;;  %vm820_vm3 = vcmask 1043456  }
  0x15   :  { %975 = vmatmul.mubr.msk.f32.vlgmr.msra.gmra.mrb[0].mxu0 %vm210_vm1, %v150_v53  ;;  %v1312_v44 = vrot.slane %v421_v38, %v1182_v22  ;;  %v795_v53 = vld [vmem:[%s1484_s4 + $0x70] sm:$0xff]  ;;  %v1325_v55 = vrot.slane %v416_v40, %v1182_v22  ;;  %vm737_vm4 = vcmask 130048   ;;  %vm730_vm5 = vcmask 883712  }
  0x16   :  { %977 = vmatprep.mubr.msk.f32.mxu0 %vm1090_vm0, %v1091_v7  ;;  %v436_v50 = vcombine.high %v1309_v42, %v1309_v42  ;;  %v1023_v57 = vpack.c.bf16 %v796_v54, %v795_v53  ;;  %v1331_v61 = vrot.slane %v438_v46, %v1182_v22  ;;  %vm756_vm6 = vcmask 1046528  }
  0x17   :  { %1006 = vmatpush1.bf16.msra.mxu1 %v1005_v16  ;;  %v437_v56 = vcombine.high %v1312_v44, %v1312_v44  ;;  %v453_v9 = vcombine.high %v1325_v55, %v1325_v55  ;;  %vm811_vm7 = vcmask 424960  }
  0x18   :  { %1007 = vmatprep.subr.bf16.mxu1 %v1089_v4  ;;  %v454_v14 = vcombine.high %v1331_v61, %v1331_v61 }
  0x19   :  { %978 = vmatmul.mubr.msk.f32.gmra.mrb[2].mxu0 %vm210_vm1, %v167_v58 }
  0x1a   :  { %980 = vmatprep.mubr.msk.f32.mxu0 %vm1090_vm0, %v1091_v7 }
  0x1b   :  { %1009 = vmatpush1.bf16.msra.mxu1 %v1008_v20 }
  0x1c   :  { %1010 = vmatprep.subr.bf16.mxu1 %v1089_v4 }
  0x1d   :  { %981 = vmatmul.mubr.msk.f32.gmra.mrb[4].mxu0 %vm210_vm1, %v184_v0 }
  0x1e   :  { %983 = vmatprep.mubr.msk.f32.mxu0 %vm1090_vm0, %v1091_v7 }
  0x1f   :  { %1012 = vmatpush1.bf16.msra.mxu1 %v1011_v25 }
  0x20   :  { %1013 = vmatprep.subr.bf16.mxu1 %v1089_v4 }
  0x21   :  { %984 = vmatmul.mubr.msk.f32.gmra.mrb[6].mxu0 %vm210_vm1, %v201_v5 }
  0x22   :  { %986 = vmatprep.mubr.msk.f32.mxu0 %vm1090_vm0, %v1091_v7 }
  0x23   :  { %1015 = vmatpush1.bf16.msra.mxu1 %v1014_v28 }
  0x24   :  { %1016 = vmatprep.subr.bf16.mxu1 %v1089_v4 }
  0x25   :  { %987 = vmatmul.mubr.msk.f32.gmra.mrb[8].mxu0 %vm210_vm1, %v209_v8 }
  0x27   :  { %1018 = vmatpush1.bf16.msra.mxu1 %v1017_v32 }
  0x28   :  { %1019 = vmatprep.subr.bf16.mxu1 %v1089_v4 }
  0x2b   :  { %1021 = vmatpush1.bf16.msra.mxu1 %v1020_v35 }
  0x2c   :  { %1022 = vmatprep.subr.bf16.mxu1 %v1089_v4 }
  0x2f   :  { %1024 = vmatpush1.bf16.msra.mxu1 %v1023_v57 }
  0x30   :  { %1025 = vmatprep.subr.bf16.mxu1 %v1089_v4 }
  0xe8   :  { %v287_v39 = vpop.f32.mrb[0].mxu0 }
  0xe9   :  { %v288_v41 = vadd.f32 %v1302_v37, %v287_v39  ;;  %v976_v43 = vpop.f32.mrb[1].mxu0 }
  0xeb   :  { %v311_v45 = vmax.f32 %v288_v41, 0.0 }
  0xec   :  { %v292_v47 = vpop.f32.mrb[2].mxu0 }
  0xed   :  { %v321_v48 = vcombine.high %v311_v45, %v311_v45  ;;  %v328_v49 = vrot.slane %v311_v45, %v1182_v22  ;;  %v293_v51 = vadd.f32 %v1302_v37, %v292_v47  ;;  %v979_v52 = vpop.f32.mrb[3].mxu0 }
  0xef   :  { %v335_v58 = vrot.slane %v321_v48, %v1182_v22  ;;  %v336_v59 = vcombine.high %v328_v49, %v328_v49  ;;  %v312_v60 = vmax.f32 %v293_v51, 0.0  ;;  %v471_v63 = vmul.f32 %v1309_v42, %v328_v49 }
  0xf0   :  { %v297_v0 = vpop.f32.mrb[4].mxu0 }
  0xf1   :  { %v337_v1 = vcombine.high %v335_v58, %v335_v58  ;;  %v472_v2 = vmul.f32 %v436_v50, %v336_v59  ;;  %v473_v3 = vmul.f32 %v1312_v44, %v335_v58  ;;  %v338_v5 = vcombine.high %v312_v60, %v312_v60  ;;  %v982_v6 = vpop.f32.mrb[5].mxu0 }
  0xf2   :  { %v345_v8 = vrot.slane %v312_v60, %v1182_v22  ;;  %v298_v10 = vadd.f32 %v1302_v37, %v297_v0 }
  0xf3   :  { %v352_v11 = vrot.slane %v338_v5, %v1182_v22  ;;  %v474_v15 = vmul.f32 %v437_v56, %v337_v1  ;;  %v505_v16 = vcombine.low %v471_v63, %v472_v2  ;;  %v632_v24 = vcombine.low %v472_v2, %v473_v3 }
  0xf4   :  { %v353_v17 = vcombine.high %v345_v8, %v345_v8  ;;  %v475_v18 = vmul.f32 %v1325_v55, %v345_v8  ;;  %v313_v20 = vmax.f32 %v298_v10, 0.0  ;;  %v302_v21 = vpop.f32.mrb[6].mxu0 }
  0xf5   :  { %v354_v25 = vcombine.high %v352_v11, %v352_v11  ;;  %v1345_v26 = vmul.f32 %v1331_v61, %v352_v11  ;;  %v303_v28 = vadd.f32 %v1302_v37, %v302_v21  ;;  %v985_v29 = vpop.f32.mrb[7].mxu0  ;;  %v506_v31 = vcombine.low %v473_v3, %v474_v15 }
  0xf6   :  { %v476_v32 = vmul.f32 %v453_v9, %v353_v17  ;;  %v355_v33 = vcombine.high %v313_v20, %v313_v20  ;;  %v362_v34 = vrot.slane %v313_v20, %v1182_v22  ;;  %v513_v35 = vrot.slane %v505_v16, %v1182_v22 }
  0xf7   :  { %v478_v36 = vmul.f32 %v454_v14, %v354_v25  ;;  %v314_v38 = vmax.f32 %v303_v28, 0.0  ;;  %v520_v39 = vrot.slane %v506_v31, %v1182_v22  ;;  %v633_v40 = vcombine.low %v474_v15, %v475_v18 }
  0xf8   :  { %v522_v41 = vcombine.low %v475_v18, %v476_v32  ;;  %v369_v43 = vrot.slane %v355_v33, %v1182_v22  ;;  %v370_v45 = vcombine.high %v362_v34, %v362_v34  ;;  %v479_v46 = vmul.f32 %v935_v27, %v362_v34  ;;  %v307_v47 = vpop.f32.mrb[8].mxu0 }
  0xf9   :  { %v372_v48 = vcombine.high %v314_v38, %v314_v38  ;;  %v379_v49 = vrot.slane %v314_v38, %v1182_v22  ;;  %v308_v51 = vadd.f32 %v1302_v37, %v307_v47  ;;  %v1357_v52 = vcombine.low %v513_v35, %v520_v39  ;;  %v988_v53 = vpop.f32.mrb[9].mxu0  ;;  %v798_v47 = vld [vmem:[%s1484_s4 + $0x88] sm:$0xff] }
  0xfa   :  { %v371_v54 = vcombine.high %v369_v43, %v369_v43  ;;  %v480_v57 = vmul.f32 %v1309_v42, %v370_v45  ;;  %v481_v58 = vmul.f32 %v436_v50, %v369_v43  ;;  %v650_v59 = vcombine.low %v478_v36, %v479_v46 }
  0xfb   :  { %v386_v60 = vrot.slane %v372_v48, %v1182_v22  ;;  %v387_v63 = vcombine.high %v379_v49, %v379_v49  ;;  %v483_v0 = vmul.f32 %v437_v56, %v379_v49  ;;  %v315_v1 = vmax.f32 %v308_v51, 0.0  ;;  %614 = vrot.lane.b32.xlu0 %v1357_v52, %s1093_s3 }
  0xfc   :  { %v482_v37 = vmul.f32 %v1312_v44, %v371_v54  ;;  %v574_v2 = vrot.slane %v1357_v52, 7  ;;  %v640_v3 = vrot.slane %v632_v24, %v1182_v22  ;;  %v647_v42 = vrot.slane %v633_v40, %v1182_v22 }
  0xfd   :  { %v388_v50 = vcombine.high %v386_v60, %v386_v60  ;;  %v484_v5 = vmul.f32 %v1325_v55, %v387_v63  ;;  %v485_v6 = vmul.f32 %v453_v9, %v386_v60  ;;  %v395_v56 = vrot.slane %v315_v1, %v1182_v22 }
  0xfe   :  { %v540_v8 = vcombine.low %v482_v37, %v483_v0  ;;  %v648_v10 = vcombine.low %v640_v3, %v647_v42  ;;  %v606_v11 = vrot.slane %v479_v46, %v1182_v22  ;;  %v523_v15 = vcombine.low %v1345_v26, %v478_v36  ;;  %v797_v46 = vld [vmem:[%s1484_s4 + $0x80] sm:$0xff] }
  0xff   :  { %v486_v44 = vmul.f32 %v1331_v61, %v388_v50  ;;  %v667_v16 = vcombine.low %v483_v0, %v484_v5  ;;  %v396_v17 = vcombine.high %v395_v56, %v395_v56  ;;  %v487_v18 = vmul.f32 %v454_v14, %v395_v56  ;;  %v802_v56 = vld [vmem:[%s1484_s4 + $0xa8] sm:$0xff] }
 0x100   :  { %v700_v20 = vrot.slane %v648_v10, 7  ;;  %618 = vrot.lane.b32.xlu0 %v606_v11, %s1093_s3  ;;  %v530_v21 = vrot.slane %v522_v41, %v1182_v22  ;;  %v537_v55 = vrot.slane %v523_v15, %v1182_v22  ;;  %v649_v9 = vcombine.low %v476_v32, %v1345_v26  ;;  %v803_v11 = vld [vmem:[%s1484_s4 + $0xb0] sm:$0xf] }
 0x101   :  { %v683_v24 = vcombine.low %v485_v6, %v486_v44  ;;  %v1376_v25 = vmul.f32 %v935_v27, %v396_v17  ;;  %v557_v28 = vcombine.low %v486_v44, %v487_v18  ;;  %v664_v29 = vrot.slane %v650_v59, %v1182_v22  ;;  %v800_v59 = vld [vmem:[%s1484_s4 + $0x98] sm:$0xff] }
 0x102   :  { %706 = vrot.lane.b32.xlu1 %v700_v20, %s1094_s14  ;;  %v538_v61 = vcombine.low %v530_v21, %v537_v55  ;;  %v657_v14 = vrot.slane %v649_v9, %v1182_v22  ;;  %v539_v31 = vcombine.low %v480_v57, %v481_v58  ;;  %v554_v33 = vrot.slane %v540_v8, %v1182_v22 }
 0x103   :  { %v684_v34 = vcombine.low %v487_v18, %v1376_v25  ;;  %v556_v35 = vcombine.low %v484_v5, %v485_v6  ;;  %v571_v26 = vrot.slane %v557_v28, %v1182_v22  ;;  %v666_v32 = vcombine.low %v481_v58, %v482_v37  ;;  %v799_v58 = vld [vmem:[%s1484_s4 + $0x90] sm:$0xff]  ;;  %v801_v6 = vld [vmem:[%s1484_s4 + $0xa0] sm:$0xff] }
 0x104   :  { %v575_v27 = vrot.slane %v538_v61, 7  ;;  %v665_v36 = vcombine.low %v657_v14, %v664_v29  ;;  %v547_v38 = vrot.slane %v539_v31, %v1182_v22  ;;  %v681_v39 = vrot.slane %v667_v16, %v1182_v22 }
 0x105   :  { %v564_v40 = vrot.slane %v556_v35, %v1182_v22  ;;  %v674_v41 = vrot.slane %v666_v32, %v1182_v22  ;;  %v691_v43 = vrot.slane %v683_v24, %v1182_v22  ;;  %v698_v45 = vrot.slane %v684_v34, %v1182_v22 }
 0x106   :  { %616 = vrot.lane.b32.xlu1 %v538_v61, %s1093_s3  ;;  %v576_v48 = vsel %vm573_vm2, %v574_v2, %v575_v27  ;;  %v701_v49 = vrot.slane %v665_v36, 7  ;;  %v555_v51 = vcombine.low %v547_v38, %v554_v33  ;;  %v1026_v0 = vpack.c.bf16 %v798_v47, %v797_v46 }
 0x107   :  { %v1044_v52 = vpack.i.bf16 %v576_v48, %v574_v2  ;;  %v572_v53 = vcombine.low %v564_v40, %v571_v26  ;;  %v682_v54 = vcombine.low %v674_v41, %v681_v39  ;;  %v699_v57 = vcombine.low %v691_v43, %v698_v45 }
 0x108   :  { %v702_v60 = vsel %vm573_vm2, %v700_v20, %v701_v49  ;;  %v577_v63 = vrot.slane %v555_v51, 7  ;;  %1027 = vmatpush1.bf16.msra.mxu1 %v1026_v0  ;;  %v1029_v42 = vpack.c.bf16 %v800_v59, %v799_v58  ;;  %v1032_v10 = vpack.c.bf16 %v802_v56, %v801_v6  ;;  %v936_v56 = vld [vmem:[%s1485_s5] ss:$0 sm:$0xff]  ;;  %s1065_s5 = scalar_lea.vmem %s919_s30, 512 }
 0x109   :  { %1045 = vrot.lane.b32.xlu0 %v1044_v52, %s1095_s23  ;;  %v578_v1 = vrot.slane %v572_v53, 7  ;;  %v703_v37 = vrot.slane %v682_v54, 7  ;;  %v704_v2 = vrot.slane %v699_v57, 7  ;;  %1028 = vmatprep.subr.bf16.mxu1 %v1089_v4  ;;  %v613_v15 = vrot.slane %v1376_v25, %v1182_v22  ;;  %p1066_p0 = scmp.ne.s32.totalorder %s919_s30, %s1065_s5  ;;  %p1071_p2 = scmp.lt.s32.totalorder %s1065_s5, %s1065_s5 }
 0x10a   :  { %710 = vrot.lane.b32.xlu1 %v701_v49, %s1094_s14  ;;  %v1049_v3 = vpack.i.bf16 %v577_v63, %v575_v27 }
 0x10b   :  { %v579_v50 = vsel %vm573_vm2, %v577_v63, %v578_v1  ;;  %v705_v5 = vsel %vm573_vm2, %v703_v37, %v704_v2  ;;  %p1072_p3 = por %p1071_p2, %p1070_p1 }
 0x10c   :  { %v1054_v8 = vpack.i.bf16 %v578_v1, %v579_v50  ;;  %1030 = vmatpush1.bf16.msra.mxu1 %v1029_v42 }
 0x10d   :  { %708 = vrot.lane.b32.xlu0 %v702_v60, %s1094_s14  ;;  %1031 = vmatprep.subr.bf16.mxu1 %v1089_v4  ;;  %p1073_p4 = pnand %p1072_p3, %p1066_p0 }
 0x10e   :  { %620 = vrot.lane.b32.xlu1 %v555_v51, %s1093_s3 }
 0x110   :  { %1033 = vmatpush1.bf16.msra.mxu1 %v1032_v10 }
 0x111   :  { %622 = vrot.lane.b32.xlu0 %v572_v53, %s1093_s3  ;;  %868 = vmatprep.subr.mxu1 %v1091_v7 }
 0x112   :  { %1050 = vrot.lane.b32.xlu1 %v1049_v3, %s1095_s23 }
 0x114   :  { %937 = vmatpush1.msk.msra.mxu1 %vm820_vm3, %v803_v11 }
 0x115   :  { %1055 = vrot.lane.b32.xlu0 %v1054_v8, %s1095_s23 }
 0x116   :  { %712 = vrot.lane.b32.xlu1 %v703_v37, %s1094_s14 }
 0x119   :  { %714 = vrot.lane.b32.xlu0 %v705_v5, %s1094_s14 }
 0x11a   :  { %624 = vrot.lane.b32.xlu1 %v613_v15, %s1093_s3 }
 0x11d   :  { %716 = vrot.lane.b32.xlu0 %v704_v2, %s1094_s14 }
 0x16d   :  { %v615_v4 = vpop.permute.xlu0 %614 }
 0x172   :  { %v619_v44 = vpop.permute.xlu0 %618 }
 0x174   :  { %v707_v7 = vpop.permute.xlu1 %706 }
 0x175   :  { %v738_v55 = vsel %vm737_vm4, %v615_v4, %v707_v7 }
 0x176   :  { %v760_v34 = vrot.slane %v738_v55, 1 }
 0x178   :  { %v617_v16 = vpop.permute.xlu1 %616 }
 0x17b   :  { %v1046_v17 = vpop.permute.xlu0 %1045 }
 0x17c   :  { %v1048_v18 = vunpack.i.h.bf16 %v1046_v17  ;;  %v1047_v20 = vunpack.i.l.bf16 %v1046_v17  ;;  %v711_v21 = vpop.permute.xlu1 %710 }
 0x17d   :  { %v740_v29 = vsel %vm737_vm4, %v619_v44, %v711_v21 }
 0x17e   :  { %v725_v22 = vsel %vm210_vm1, %v1158_v13, %v1048_v18  ;;  %v724_v9 = vsel %vm210_vm1, %v1153_v12, %v1047_v20  ;;  %v765_v13 = vrot.slane %v740_v29, 1 }
 0x17f   :  { %v709_v24 = vpop.permute.xlu0 %708  ;;  %v731_v25 = vsel %vm730_vm5, %v724_v9, %v615_v4  ;;  %v732_v28 = vsel %vm730_vm5, %v725_v22, %v617_v16 }
 0x180   :  { %v739_v61 = vsel %vm737_vm4, %v617_v16, %v709_v24  ;;  %v621_v14 = vpop.permute.xlu1 %620  ;;  %v757_v31 = vrot.slane %v731_v25, 1  ;;  %v758_v33 = vrot.slane %v732_v28, 1 }
 0x181   :  { %v761_v35 = vrot.slane %v739_v61, 1 }
 0x182   :  { %v759_v27 = vsel %vm756_vm6, %v757_v31, %v758_v33 }
 0x183   :  { %v623_v26 = vpop.permute.xlu0 %622  ;;  %v762_v12 = vsel %vm756_vm6, %v760_v34, %v761_v35  ;;  %v766_v39 = vsel %vm756_vm6, %v761_v35, %v765_v13 }
 0x184   :  { %938 = vmatprep.mubr.msk.f32.mxu1 %vm811_vm7, %v762_v12  ;;  %v1051_v32 = vpop.permute.xlu1 %1050 }
 0x185   :  { %v1053_v36 = vunpack.i.h.bf16 %v1051_v32  ;;  %v1052_v38 = vunpack.i.l.bf16 %v1051_v32  ;;  %889 = vmatmul.mubr.f32.vlgmr.msra.gmra.mrb[0].mxu1 %v759_v27 }
 0x186   :  { %939 = vmatprep.mubr.msk.f32.mxu1 %vm811_vm7, %v766_v39 }
 0x187   :  { %v726_v40 = vsel %vm210_vm1, %v1201_v30, %v1052_v38  ;;  %v1056_v41 = vpop.permute.xlu0 %1055  ;;  %v727_v43 = vsel %vm210_vm1, %v1174_v19, %v1053_v36 }
 0x188   :  { %v1058_v45 = vunpack.i.h.bf16 %v1056_v41  ;;  %v1057_v46 = vunpack.i.l.bf16 %v1056_v41  ;;  %v713_v47 = vpop.permute.xlu1 %712  ;;  %v733_v48 = vsel %vm730_vm5, %v726_v40, %v619_v44  ;;  %v734_v30 = vsel %vm730_vm5, %v727_v43, %v621_v14 }
 0x189   :  { %v763_v49 = vrot.slane %v733_v48, 1  ;;  %v741_v52 = vsel %vm737_vm4, %v621_v14, %v713_v47  ;;  %v767_v1 = vrot.slane %v734_v30, 1 }
 0x18a   :  { %v728_v51 = vsel %vm210_vm1, %v1187_v23, %v1057_v46  ;;  %v729_v58 = vsel %vm210_vm1, %v1230_v62, %v1058_v45  ;;  %v770_v63 = vrot.slane %v741_v52, 1 }
 0x18b   :  { %v715_v53 = vpop.permute.xlu0 %714  ;;  %v764_v54 = vsel %vm756_vm6, %v758_v33, %v763_v49  ;;  %v735_v57 = vsel %vm730_vm5, %v728_v51, %v623_v26 }
 0x18c   :  { %v742_v19 = vsel %vm737_vm4, %v623_v26, %v715_v53  ;;  %894 = vmatmul.mubr.f32.gmra.mrb[2].mxu1 %v764_v54  ;;  %v625_v59 = vpop.permute.xlu1 %624  ;;  %v768_v60 = vrot.slane %v735_v57, 1 }
 0x18d   :  { %v771_v0 = vrot.slane %v742_v19, 1  ;;  %v736_v23 = vsel %vm730_vm5, %v729_v58, %v625_v59 }
 0x18e   :  { %v773_v3 = vrot.slane %v736_v23, 1  ;;  %v769_v50 = vsel %vm756_vm6, %v767_v1, %v768_v60 }
 0x18f   :  { %v717_v37 = vpop.permute.xlu0 %716  ;;  %v772_v2 = vsel %vm756_vm6, %v770_v63, %v771_v0 }
 0x190   :  { %v743_v42 = vsel %vm737_vm4, %v625_v59, %v717_v37  ;;  %940 = vmatprep.mubr.msk.f32.mxu1 %vm811_vm7, %v772_v2  ;;  %v774_v6 = vsel %vm756_vm6, %v768_v60, %v773_v3 }
 0x191   :  { %v775_v5 = vrot.slane %v743_v42, 1  ;;  %899 = vmatmul.mubr.f32.gmra.mrb[4].mxu1 %v769_v50 }
 0x193   :  { %v776_v62 = vsel %vm756_vm6, %v771_v0, %v775_v5 }
 0x194   :  { %941 = vmatprep.mubr.msk.f32.mxu1 %vm811_vm7, %v776_v62 }
 0x195   :  { %904 = vmatmul.mubr.f32.gmra.mrb[6].mxu1 %v774_v6 }
 0x258   :  { %v890_v8 = vpop.f32.mrb[0].mxu1 }
 0x259   :  { %v891_v10 = vadd.f32 %v936_v56, %v890_v8  ;;  %v892_v11 = vpop.f32.mrb[1].mxu1 }
 0x25b   :  { %909 = vst [vmem:[#allocation2] sm:$0xff] %v891_v10 }
 0x25f   :  { %v895_v15 = vpop.f32.mrb[2].mxu1 }
 0x260   :  { %v896_v4 = vadd.f32 %v936_v56, %v895_v15  ;;  %v897_v7 = vpop.f32.mrb[3].mxu1 }
 0x262   :  { %910 = vst [vmem:[#allocation2 + $0x8] sm:$0xff] %v896_v4 }
 0x264   :  { %v900_v44 = vpop.f32.mrb[4].mxu1 }
 0x265   :  { %v901_v16 = vadd.f32 %v936_v56, %v900_v44  ;;  %v902_v17 = vpop.f32.mrb[5].mxu1 }
 0x267   :  { %911 = vst [vmem:[#allocation2 + $0x10] sm:$0xff] %v901_v16 }
 0x268   :  { %v905_v18 = vpop.f32.mrb[6].mxu1 }
 0x269   :  { %v906_v20 = vadd.f32 %v936_v56, %v905_v18  ;;  %v907_v21 = vpop.f32.mrb[7].mxu1 }
 0x26b   :  { %912 = vst [vmem:[#allocation2 + $0x18] sm:$0xff] %v906_v20 }
 0x26c   :  { %1076 = shalt.err (!%p1073_p4)
}
 0x26d   :  { %s1077_s2 = scalar_lea.hbm %s1486_s6, 512 }
 0x26e   :  { %p1078_p5 = scmp.ne.s32.totalorder %s1486_s6, %s1077_s2  ;;  %p1081_p6 = scmp.lt.u32.totalorder %s1077_s2, %s1486_s6 }
 0x270   :  { %p1083_p7 = pnand %p1081_p6, %p1078_p5 }
 0x272   :  { %1086 = shalt.err (!%p1083_p7)
}
 0x273   :  { %s1097_s13 = smov 128   ;;  %s1098_s3 = smov 8  }
 0x274   :  { %924 = dma.vmem_to_hbm [thread:$0]  %s919_s30, 512, %s1486_s6, [#allocation3], %s1097_s13, %s1097_s13, %s1098_s3  }
 0x275   :  { %1087 = dma.done.wait [#allocation3], 512  }
 0x276   :  { %1088 = vsyncadd [#allocation3], 4294966784 }
 0x277   :  { %928 = vsyncpa [#allocation3], 1 }

</bundles_post_ra>
